<compile_context>
chip_gen: v7x
topology: tpu7x:2x2x1
jax: 0.10.0
libtpu: 0.0.40
codegen_flags: <defaults>
</compile_context>

<pallas_src>
import functools
import math

import jax
import jax.numpy as jnp
from jax import lax
from jax.experimental import pallas as pl
from jax.experimental.pallas import tpu as pltpu

KERNEL_SIZE = 3
CROP = (1, 1)                              # slice(1, -1) on the time axis
_INV_SQRT2 = 0.7071067811865476
_SQRT_2_OVER_PI = 0.7978845608028654


def _round_up(x, m):
    return ((x + m - 1) // m) * m


def _choose_tiling(n, c_pad, t, *, target_lanes=4096, tile_budget_bytes=3 << 20):
    """Pick the packed-lane layout.

    Returns (t_stride, block_lanes, batches_per_block) with
      * t_stride lanes reserved per batch element (== t whenever possible),
      * block_lanes a multiple of both 128 and t_stride (batch-aligned blocks,
        so lane rolls never leak across valid outputs),
      * c_pad * block_lanes * 4 bytes <= tile_budget_bytes (VMEM-safe on v7x).
    """
    max_lanes = max(128, (tile_budget_bytes // 4) // c_pad)
    lcm_t = (t * 128) // math.gcd(t, 128)
    if lcm_t <= max_lanes:
        t_stride = t                       # zero per-batch time padding
        unit = lcm_t
    else:
        t_stride = _round_up(t, 128)       # long rows: pad time to a 128-mult
        unit = t_stride
    # NOTE: if a single (padded) row still exceeds the lane budget we keep it
    # whole; halo-based time tiling is not implemented (never needed for
    # CEBRA-sized inputs where T is tiny).
    units_cap = max(1, max_lanes // unit)
    units_target = max(1, target_lanes // unit)
    units_total = -(-(n * t_stride) // unit)          # ceil
    units_half = max(1, -(-units_total // 2))         # aim for >=2 grid steps
    units = max(1, min(units_cap, units_target, units_half))
    block_lanes = units * unit
    return t_stride, block_lanes, block_lanes // t_stride


def _skip_kernel(x_ref, w_ref, b_ref, o_ref, *, approximate):
    # x_ref: (C_pad, BL)        packed input slab (storage dtype)
    # w_ref: (K, C_pad, C_pad)  conv taps, w_ref[k][i, j] == W[i, j, k]
    # b_ref: (C_pad, 1)         bias, f32
    # o_ref: (C_pad, BL)        packed output slab (lane j = conv-output time j)
    x = x_ref[...]
    bl = x.shape[-1]

    # One batch-merged MXU matmul per tap; f32 accumulation.
    z0 = jnp.dot(w_ref[0], x, preferred_element_type=jnp.float32)
    z1 = jnp.dot(w_ref[1], x, preferred_element_type=jnp.float32)
    z2 = jnp.dot(w_ref[2], x, preferred_element_type=jnp.float32)

    # y[:, j] = Z0[:, j] + Z1[:, j+1] + Z2[:, j+2] + bias     (valid conv).
    # roll(v, bl-k)[j] == v[(j+k) % bl]; the wrapped lanes only land in the
    # cropped per-batch tail / padding (block boundaries are batch-aligned).
    acc = (z0
           + pltpu.roll(z1, shift=bl - 1, axis=1)
           + pltpu.roll(z2, shift=bl - 2, axis=1)
           + b_ref[...])                                   # single broadcast

    if approximate:
        # tanh GELU -> EUP slot (frees the VALU in the small-C regime).
        inner = _SQRT_2_OVER_PI * (acc + 0.044715 * acc * acc * acc)
        gelu = 0.5 * acc * (1.0 + jnp.tanh(inner))
    else:
        # Exact erf GELU (matches torch.nn.GELU(approximate='none')).
        gelu = 0.5 * acc * (1.0 + lax.erf(acc * _INV_SQRT2))

    # Skip path: inp[..., 1:-1]  ==  x shifted left by one lane (f32 add).
    skip = pltpu.roll(x, shift=bl - 1, axis=1).astype(jnp.float32)

    o_ref[...] = (skip + gelu).astype(o_ref.dtype)


@functools.partial(jax.jit, static_argnames=("storage_dtype", "approximate_gelu"))
def skip_forward(x, weight, bias, *, storage_dtype=None, approximate_gelu=False):
    """_Skip(Conv1d(C, C, 3), GELU(), crop=(1,1)) forward.

    x: (N, C, T); weight: (C, C, 3); bias: (C,).  Returns (N, C, T-2).
    storage_dtype=jnp.bfloat16 halves HBM input bytes (v6e/v7x); GELU, the
    skip add and accumulation stay f32.
    """
    n, c, t = x.shape
    if t < KERNEL_SIZE:
        raise ValueError("time axis must be >= kernel size (3)")
    t_out = t - (KERNEL_SIZE - 1)

    sdt = jnp.dtype(x.dtype if storage_dtype is None else storage_dtype)
    odt = jnp.dtype(x.dtype)

    c_pad = _round_up(c, 8)
    t_stride, bl, bpb = _choose_tiling(n, c_pad, t)
    n_pad = _round_up(n, bpb)
    lanes_total = n_pad * t_stride
    grid = (lanes_total // bl,)

    # ---- pack (N, C, T) -> channel-major, batch-concatenated lanes ----------
    x_t = jnp.transpose(x, (1, 0, 2)).astype(sdt)              # (C, N, T)
    if c_pad == c and n_pad == n and t_stride == t:
        x_pk = x_t.reshape(c_pad, lanes_total)                 # no pad needed
    else:
        x_pk = (jnp.zeros((c_pad, n_pad, t_stride), sdt)
                .at[:c, :n, :t].set(x_t)
                .reshape(c_pad, lanes_total))

    # Taps stacked on a leading axis: w_p[k, i, j] = W[i, j, k].
    w_p = (jnp.zeros((KERNEL_SIZE, c_pad, c_pad), sdt)
           .at[:, :c, :c].set(jnp.transpose(weight, (2, 0, 1)).astype(sdt)))
    b_col = jnp.zeros((c_pad, 1), jnp.float32).at[:c, 0].set(bias.astype(jnp.float32))

    # ---- VMEM budget / cost estimate (padded sizes actually moved) ----------
    tile_f32 = c_pad * bl * 4
    vmem_limit = int(min(
        60 << 20,
        max(24 << 20,
            2 * c_pad * bl * (sdt.itemsize + odt.itemsize)   # double-buffered io
            + 10 * tile_f32                                  # temporaries
            + (2 << 20))))
    cost = pl.CostEstimate(
        flops=2 * KERNEL_SIZE * c_pad * c_pad * lanes_total,
        transcendentals=c_pad * lanes_total,
        bytes_accessed=(c_pad * lanes_total * (sdt.itemsize + odt.itemsize)
                        + KERNEL_SIZE * c_pad * c_pad * sdt.itemsize
                        + c_pad * 4),
    )

    kernel = functools.partial(_skip_kernel, approximate=approximate_gelu)

    out_pk = pl.pallas_call(
        kernel,
        out_shape=jax.ShapeDtypeStruct((c_pad, lanes_total), odt),
        grid_spec=pltpu.PrefetchScalarGridSpec(
            num_scalar_prefetch=0,
            grid=grid,
            in_specs=[
                pl.BlockSpec((c_pad, bl), lambda i: (0, i)),
                pl.BlockSpec((KERNEL_SIZE, c_pad, c_pad), lambda i: (0, 0, 0)),
                pl.BlockSpec((c_pad, 1), lambda i: (0, 0)),
            ],
            out_specs=pl.BlockSpec((c_pad, bl), lambda i: (0, i)),
        ),
        compiler_params=pltpu.CompilerParams(
            dimension_semantics=("parallel",),
            vmem_limit_bytes=vmem_limit),
        cost_estimate=cost,
    )(x_pk, w_p, b_col)

    # ---- unpack: crop padded channels / batches / per-batch time tail -------
    out = out_pk.reshape(c_pad, n_pad, t_stride)[:c, :n, :t_out]
    return jnp.transpose(out, (1, 0, 2))


def _reference(x, weight, bias):
    # Pure-JAX reference: Conv1d(valid) -> exact GELU -> skip add.
    y = lax.conv_general_dilated(
        x, weight, window_strides=(1,), padding="VALID",
        dimension_numbers=("NCH", "OIH", "NCH"))
    y = y + bias.reshape(1, -1, 1)
    y = 0.5 * y * (1.0 + lax.erf(y / jnp.sqrt(2.0)))
    return x[..., CROP[0]:-CROP[1]] + y


if __name__ == "__main__":
    key = jax.random.PRNGKey(0)
    kx, kw, kb, kx2 = jax.random.split(key, 4)

    # Small shape implied by the module's 3-D forward: (N, C, T) = (2, 4, 16).
    N, C, T = 2, 4, 16
    x = jax.random.normal(kx, (N, C, T), dtype=jnp.float32)
    weight = jax.random.normal(kw, (C, C, KERNEL_SIZE), dtype=jnp.float32) * 0.2
    bias = jax.random.normal(kb, (C,), dtype=jnp.float32) * 0.1

    out = jax.block_until_ready(skip_forward(x, weight, bias))
    ref = _reference(x, weight, bias)
    assert out.shape == (N, C, T - 2)
    assert jnp.allclose(out, ref, atol=1e-5, rtol=1e-5)

    # Second shape exercising the multi-block (grid >= 2) packed-lane path.
    N2, C2, T2 = 64, 8, 12
    x2 = jax.random.normal(kx2, (N2, C2, T2), dtype=jnp.float32)
    w2 = jax.random.normal(kw, (C2, C2, KERNEL_SIZE), dtype=jnp.float32) * 0.2
    b2 = jax.random.normal(kb, (C2,), dtype=jnp.float32) * 0.1
    out2 = jax.block_until_ready(skip_forward(x2, w2, b2))
    ref2 = _reference(x2, w2, b2)
    assert out2.shape == (N2, C2, T2 - 2)
    assert jnp.allclose(out2, ref2, atol=1e-5, rtol=1e-5)

    print("KERNEL_OK")
</pallas_src>

<mosaic_0001>
module attributes {stable_mosaic.version = 11 : i64} {
  func.func @_skip_kernel(%arg0: i32, %arg1: memref<8x128xf32, #tpu.memory_space<vmem>>, %arg2: memref<3x8x8xf32, #tpu.memory_space<vmem>>, %arg3: memref<8x1xf32, #tpu.memory_space<vmem>>, %arg4: memref<8x128xf32, #tpu.memory_space<vmem>>) attributes {dimension_semantics = [#tpu.dimension_semantics<parallel>], iteration_bounds = array<i64: 1>, scalar_prefetch = 0 : i64, scratch_operands = 0 : i64, tpu.core_type = #tpu.core_type<tc>, window_params = [{transform_indices = @transform_0, window_bounds = array<i64: 8, 128>}, {pipeline_mode = #tpu.pipeline_mode<synchronous>, transform_indices = @transform_1, window_bounds = array<i64: 3, 8, 8>}, {pipeline_mode = #tpu.pipeline_mode<synchronous>, transform_indices = @transform_2, window_bounds = array<i64: 8, 1>}, {transform_indices = @transform_3, window_bounds = array<i64: 8, 128>}]} {
    %c0 = arith.constant 0 : index
    %c0_0 = arith.constant 0 : index
    %0 = vector.load %arg1[%c0, %c0_0] : memref<8x128xf32, #tpu.memory_space<vmem>>, vector<8x128xf32>
    %c0_1 = arith.constant 0 : index
    %c0_2 = arith.constant 0 : index
    %c0_3 = arith.constant 0 : index
    %1 = vector.load %arg2[%c0_1, %c0_2, %c0_3] : memref<3x8x8xf32, #tpu.memory_space<vmem>>, vector<1x8x8xf32>
    %2 = vector.shape_cast %1 : vector<1x8x8xf32> to vector<8x8xf32>
    %cst = arith.constant dense<0.000000e+00> : vector<8x128xf32>
    %3 = tpu.matmul %2, %0, %cst {dimension_numbers = #tpu.dot_dimension_numbers<[1], [0], [0], [1], [0, 0, 1, 1], [], []>} : vector<8x8xf32>, vector<8x128xf32>, vector<8x128xf32> -> vector<8x128xf32>
    %c1 = arith.constant 1 : index
    %c0_4 = arith.constant 0 : index
    %c0_5 = arith.constant 0 : index
    %4 = vector.load %arg2[%c1, %c0_4, %c0_5] : memref<3x8x8xf32, #tpu.memory_space<vmem>>, vector<1x8x8xf32>
    %5 = vector.shape_cast %4 : vector<1x8x8xf32> to vector<8x8xf32>
    %cst_6 = arith.constant dense<0.000000e+00> : vector<8x128xf32>
    %6 = tpu.matmul %5, %0, %cst_6 {dimension_numbers = #tpu.dot_dimension_numbers<[1], [0], [0], [1], [0, 0, 1, 1], [], []>} : vector<8x8xf32>, vector<8x128xf32>, vector<8x128xf32> -> vector<8x128xf32>
    %c2 = arith.constant 2 : index
    %c0_7 = arith.constant 0 : index
    %c0_8 = arith.constant 0 : index
    %7 = vector.load %arg2[%c2, %c0_7, %c0_8] : memref<3x8x8xf32, #tpu.memory_space<vmem>>, vector<1x8x8xf32>
    %8 = vector.shape_cast %7 : vector<1x8x8xf32> to vector<8x8xf32>
    %cst_9 = arith.constant dense<0.000000e+00> : vector<8x128xf32>
    %9 = tpu.matmul %8, %0, %cst_9 {dimension_numbers = #tpu.dot_dimension_numbers<[1], [0], [0], [1], [0, 0, 1, 1], [], []>} : vector<8x8xf32>, vector<8x128xf32>, vector<8x128xf32> -> vector<8x128xf32>
    %c127_i32 = arith.constant 127 : i32
    %10 = tpu.dynamic_rotate %6 by %c127_i32 dim 1 : vector<8x128xf32>, i32 -> vector<8x128xf32>
    %11 = arith.addf %3, %10 : vector<8x128xf32>
    %c126_i32 = arith.constant 126 : i32
    %12 = tpu.dynamic_rotate %9 by %c126_i32 dim 1 : vector<8x128xf32>, i32 -> vector<8x128xf32>
    %13 = arith.addf %11, %12 : vector<8x128xf32>
    %c0_10 = arith.constant 0 : index
    %c0_11 = arith.constant 0 : index
    %14 = vector.load %arg3[%c0_10, %c0_11] : memref<8x1xf32, #tpu.memory_space<vmem>>, vector<8x1xf32>
    %15 = vector.broadcast %14 : vector<8x1xf32> to vector<8x128xf32>
    %16 = arith.addf %13, %15 : vector<8x128xf32>
    %cst_12 = arith.constant 5.000000e-01 : f32
    %17 = vector.broadcast %cst_12 : f32 to vector<8x128xf32>
    %18 = arith.mulf %17, %16 : vector<8x128xf32>
    %cst_13 = arith.constant 0.707106769 : f32
    %19 = vector.broadcast %cst_13 : f32 to vector<8x128xf32>
    %20 = arith.mulf %16, %19 : vector<8x128xf32>
    %21 = math.erf %20 : vector<8x128xf32>
    %cst_14 = arith.constant 1.000000e+00 : f32
    %22 = vector.broadcast %cst_14 : f32 to vector<8x128xf32>
    %23 = arith.addf %22, %21 : vector<8x128xf32>
    %24 = arith.mulf %18, %23 : vector<8x128xf32>
    %c127_i32_15 = arith.constant 127 : i32
    %25 = tpu.dynamic_rotate %0 by %c127_i32_15 dim 1 : vector<8x128xf32>, i32 -> vector<8x128xf32>
    %26 = arith.addf %25, %24 : vector<8x128xf32>
    %c0_16 = arith.constant 0 : index
    %c0_17 = arith.constant 0 : index
    %27 = vector.load %arg4[%c0_16, %c0_17] : memref<8x128xf32, #tpu.memory_space<vmem>>, vector<8x128xf32>
    tpu.vector_store %arg4[%c0_16, %c0_17], %26 {strides = array<i32>} : memref<8x128xf32, #tpu.memory_space<vmem>>, vector<8x128xf32>,
    return
  }
  func.func @transform_0(%arg0: i32) -> (i32, i32) {
    %c0_i32 = arith.constant 0 : i32
    %c0_i32_0 = arith.constant 0 : i32
    return %c0_i32, %arg0 : i32, i32
  }
  func.func @transform_1(%arg0: i32) -> (i32, i32, i32) {
    %c0_i32 = arith.constant 0 : i32
    %c0_i32_0 = arith.constant 0 : i32
    %c0_i32_1 = arith.constant 0 : i32
    %c0_i32_2 = arith.constant 0 : i32
    return %c0_i32, %c0_i32_0, %c0_i32_1 : i32, i32, i32
  }
  func.func @transform_2(%arg0: i32) -> (i32, i32) {
    %c0_i32 = arith.constant 0 : i32
    %c0_i32_0 = arith.constant 0 : i32
    %c0_i32_1 = arith.constant 0 : i32
    return %c0_i32, %c0_i32_0 : i32, i32
  }
  func.func @transform_3(%arg0: i32) -> (i32, i32) {
    %c0_i32 = arith.constant 0 : i32
    %c0_i32_0 = arith.constant 0 : i32
    return %c0_i32, %arg0 : i32, i32
  }
}

</mosaic_0001>

<bundles_post_ra>
// kernel: skip_forward.1
= control target key start
LH: loop header
LB: loop body
LE: loop exit
PB: predicated region body
PF: predicated region fallthrough
CT: control target
= control target key end

     0   :  { %vm18_vm0 = vcmask 64512   ;;  %v299_v0 = vmov 0.0   ;;  %vm300_vm1 = vmmov 0   ;;  %v301_v6 = vmov 0   ;;  %s302_s21 = smov 127   ;;  %s345_s0 = inlined_call_operand.vmem [shape: f32[8,128], index: 0, kind: input, shape index: {}]   ;;  %s346_s1 = inlined_call_operand.vmem [shape: f32[3,8,8], index: 1, kind: input, shape index: {}]   ;;  %s347_s2 = inlined_call_operand.vmem [shape: f32[8,1], index: 2, kind: input, shape index: {}]   ;;  %s348_s3 = inlined_call_operand.vmem [shape: f32[8,128], index: 3, kind: output, shape index: {}]  }
   0x1   :  { %276 = vmatprep.subr.mxu0 %v299_v0  ;;  %v14_v1 = vld [vmem:[%s345_s0] sm:$0xff]  ;;  %278 = vmatprep.mubr.msk.f32.mxu0 %vm300_vm1, %v299_v0  ;;  %v265_v2 = vld [vmem:[%s346_s1 + $0x8] sm:$0xff]  ;;  %v267_v3 = vld [vmem:[%s346_s1 + $0x10] sm:$0xff] }
   0x2   :  { %277 = vmatpush3.msra.mxu0 %v14_v1  ;;  %281 = vmatprep.subr.mxu1 %v299_v0  ;;  %v15_v4 = vld [vmem:[%s346_s1] sm:$0xff]  ;;  %s303_s1 = smov 126  }
   0x3   :  { %279 = vmatmul.mubr.msk.f32.vlgmr.msra.gmra.mrb[0].mxu0 %vm18_vm0, %v265_v2  ;;  %282 = vmatpush3.msra.mxu1 %v14_v1  ;;  %v245_v5 = vld [vmem:[%s347_s2] sm:$0xff] }
   0x4   :  { %283 = vmatprep.mubr.msk.f32.mxu1 %vm300_vm1, %v299_v0  ;;  %286 = vmatprep.subr.mxu0 %v299_v0 }
   0x5   :  { %284 = vmatmul.mubr.msk.f32.vlgmr.msra.gmra.mrb[0].mxu1 %vm18_vm0, %v267_v3  ;;  %287 = vmatpush3.msra.mxu0 %v14_v1 }
   0x6   :  { %288 = vmatprep.mubr.msk.f32.mxu0 %vm300_vm1, %v299_v0  ;;  %296 = vset.pattern.permute.xlu0 %v301_v6 }
   0x7   :  { %289 = vmatmul.mubr.msk.f32.vlgmr.msra.gmra.mrb[2].mxu0 %vm18_vm0, %v15_v4  ;;  %248 = vperm.xlu0 %296, %v245_v5  }
  0x86   :  { %v249_v13 = vpop.permute.xlu0 %248 }
  0xd6   :  { %v88_v7 = vpop.f32.mrb[0].mxu0 }
  0xd7   :  { %167 = vrot.lane.b32.xlu0 %v88_v7, %s302_s21  ;;  %v280_v8 = vpop.f32.mrb[1].mxu0 }
  0xd8   :  { %v163_v9 = vpop.f32.mrb[0].mxu1 }
  0xd9   :  { %v285_v10 = vpop.f32.mrb[1].mxu1  ;;  %242 = vrot.lane.b32.xlu1 %v163_v9, %s303_s1 }
  0xda   :  { %v238_v11 = vpop.f32.mrb[2].mxu0 }
  0xdb   :  { %v290_v12 = vpop.f32.mrb[3].mxu0 }
  0xdd   :  { %257 = vrot.lane.b32.xlu1 %v14_v1, %s302_s21 }
 0x149   :  { %v168_v14 = vpop.permute.xlu0 %167 }
 0x14a   :  { %v239_v15 = vadd.f32 %v238_v11, %v168_v14 }
 0x14b   :  { %v243_v16 = vpop.permute.xlu1 %242 }
 0x14c   :  { %v244_v17 = vadd.f32 %v243_v16, %v239_v15 }
 0x14e   :  { %v251_v18 = vadd.f32 %v249_v13, %v244_v17 }
 0x14f   :  { %v258_v23 = vpop.permute.xlu1 %257 }
 0x150   :  { %v253_v19 = vmul.f32 0.70710677, %v251_v18  ;;  %v252_v21 = vmul.f32 0.5, %v251_v18 }
 0x152   :  { %297 = verf.f32 %v253_v19 }
 0x15c   :  { %v298_v20 = vpop.eup %297 }
 0x15d   :  { %v255_v22 = vadd.f32 1.0, %v298_v20 }
 0x15f   :  { %v256_v24 = vmul.f32 %v255_v22, %v252_v21 }
 0x161   :  { %v259_v25 = vadd.f32 %v258_v23, %v256_v24 }
 0x163   :  { %260 = vst [vmem:[%s348_s3] sm:$0xff] %v259_v25 }

</bundles_post_ra>
